<compile_context>
chip_gen: v7x
topology: tpu7x:2x2x1
jax: 0.10.0
libtpu: 0.0.40
codegen_flags: <defaults>
</compile_context>

<pallas_src>
import math

import jax
import jax.numpy as jnp
from jax.experimental import pallas as pl
from jax.experimental.pallas import tpu as pltpu

_LANE = 128
_MIN_SPLIT_BYTES = 1 << 20       # below this a single full-extent block is fine
_MIN_BLOCK_BYTES = 512 << 10     # never shrink blocks below this when splitting


def _copy_kernel(x_ref, o_ref):
    # Straight contiguous copy of one lane-dense block.
    o_ref[...] = x_ref[...]


def _cdiv(a, b):
    return -(-a // b)


def _round_up(a, m):
    return _cdiv(a, m) * m


def _resolve_shape(total, shape):
    """Resolve a torch.view-style shape (supports a single -1)."""
    shape = list(shape)
    neg = [i for i, s in enumerate(shape) if s == -1]
    if len(neg) > 1:
        raise ValueError("only one -1 allowed in view shape")
    if neg:
        known = 1
        for i, s in enumerate(shape):
            if i != neg[0]:
                known *= s
        if known == 0 or total % known != 0:
            raise ValueError(f"cannot view {total} elements as {tuple(shape)}")
        shape[neg[0]] = total // known
    if math.prod(shape) != total:
        raise ValueError(f"cannot view {total} elements as {tuple(shape)}")
    return tuple(shape)


def _pick_width(total):
    """Widest lane-dense last dim (multiple of 128) that divides `total`."""
    for w in (8192, 4096, 2048, 1024, 512, 256, 128):
        if total % w == 0:
            return w
    return None


def _chip_vmem_capacity():
    """Physical VMEM bytes of the current chip (conservative default: v7x)."""
    try:
        cap = int(pltpu.get_tpu_info().vmem_capacity_bytes)
        if cap > 0:
            return cap
    except Exception:
        pass
    return 64 << 20


def _plan_block_rows(rows, row_pack, row_bytes, tgt_block_bytes):
    """Pick sublane-aligned block rows.

    Goals (in order): never exceed ~1.25x the per-chip block-byte target,
    split anything > ~1 MiB into >= 2 blocks so the DMA pipeline overlaps,
    prefer an even grid (~8 steps) with a well-filled trailing block so the
    two v7x TensorCores stay balanced, keep every block >= 512 KiB.
    """
    total_bytes = rows * row_bytes
    if total_bytes <= _MIN_SPLIT_BYTES or rows <= 2 * row_pack:
        return rows                                   # single full-extent block
    hard_cap = tgt_block_bytes + tgt_block_bytes // 4
    by_size = _cdiv(total_bytes, tgt_block_bytes)
    max_blocks = max(2, min(total_bytes // _MIN_BLOCK_BYTES, rows // row_pack))
    want = min(max(by_size, 8), max_blocks)

    best = None
    fallback = None
    for n in range(max(2, want - 3), min(max_blocks, want + 4) + 1):
        br = min(rows, max(row_pack, _round_up(_cdiv(rows, n), row_pack)))
        g = _cdiv(rows, br)
        if g < 2:
            continue
        if fallback is None or abs(g - want) < abs(fallback[1] - want):
            fallback = (br, g)
        if br * row_bytes > hard_cap:
            continue
        tail = rows - (g - 1) * br                    # rows in last (ragged) block
        # Prefer: even grid (megacore balance), then full tail, then target count.
        score = (g % 2, -(tail / br), abs(g - want))
        if best is None or score < best[0]:
            best = (score, br)
    if best is not None:
        return best[1]
    if fallback is not None:
        return fallback[0]
    return rows


def _materialize_copy(flat):
    """Pad-free, lane-dense Pallas copy of a flat contiguous element stream."""
    total = flat.size
    itemsize = jnp.dtype(flat.dtype).itemsize

    w = _pick_width(total)
    if w is None:
        # TODO(synk): streams whose size is not a multiple of 128 lanes fall
        # back to XLA's zero-cost reshape; a (1, total) single block would
        # sublane-pad 8-32x in VMEM and a pad+trim pass would add HBM traffic.
        return flat
    rows = total // w
    x2d = jnp.reshape(flat, (rows, w))

    row_bytes = w * itemsize
    row_pack = max(8, 32 // itemsize)                 # 8 f32 / 16 bf16 / 32 int8

    vmem_cap = _chip_vmem_capacity()
    # ~8 MiB blocks on v7x (64 MiB VMEM), ~16 MiB on v5e/v6e (128 MiB VMEM).
    tgt_block_bytes = max(4 << 20, min(16 << 20, vmem_cap // 8))

    block_rows = _plan_block_rows(rows, row_pack, row_bytes, tgt_block_bytes)
    grid = (_cdiv(rows, block_rows),)

    block_bytes = block_rows * row_bytes
    # Double-buffered in + out = 4x block live, plus headroom; never exceed
    # 3/4 of the chip's physical VMEM.
    vmem_limit = min(vmem_cap * 3 // 4, max(32 << 20, 4 * block_bytes + (8 << 20)))

    copied = pl.pallas_call(
        _copy_kernel,
        out_shape=jax.ShapeDtypeStruct((rows, w), flat.dtype),
        grid_spec=pltpu.PrefetchScalarGridSpec(
            num_scalar_prefetch=0,
            grid=grid,
            # NOTE: if xprof shows exposed DMA gaps with both v7x TCs active,
            # pipeline_mode=pl.Buffered(3) on the input spec is the next knob.
            in_specs=[pl.BlockSpec((block_rows, w), lambda i: (i, 0))],
            out_specs=pl.BlockSpec((block_rows, w), lambda i: (i, 0)),
        ),
        compiler_params=pltpu.CompilerParams(
            dimension_semantics=("parallel",),        # shards grid across v7x's 2 TCs
            vmem_limit_bytes=vmem_limit,
        ),
        cost_estimate=pl.CostEstimate(
            flops=0, transcendentals=0, bytes_accessed=2 * total * itemsize),
    )(x2d)

    return jnp.reshape(copied, (-1,))


def view_pallas(x, *shape, materialize=False):
    """Equivalent of View(*shape)(x): contiguous reinterpretation of x.

    Default (materialize=False) is the production path: a view of a contiguous
    buffer is free metadata in XLA.  materialize=True runs an explicit Pallas
    copy into a fresh buffer.
    """
    total = x.size
    out_shape = _resolve_shape(total, shape)

    # torch's `assert input.is_contiguous()` is trivially satisfied: JAX arrays
    # handed to reshape / pallas_call are dense row-major.
    if not materialize:
        return jnp.reshape(x, out_shape)

    flat = jnp.reshape(x, (-1,))
    flat = _materialize_copy(flat)
    return jnp.reshape(flat, out_shape)


if __name__ == "__main__":
    key = jax.random.PRNGKey(0)

    # Conv-style NCHW input: batch=2, channels=4, spatial=16x16.
    x = jax.random.normal(key, (2, 4, 16, 16), dtype=jnp.float32)

    # Default path: View(2, -1) as pure metadata (recommended).
    y_ref = jnp.reshape(x, (2, -1))
    y = jax.block_until_ready(view_pallas(x, 2, -1))
    assert y.shape == (2, 4 * 16 * 16), y.shape
    assert y.dtype == x.dtype
    assert bool(jnp.all(y == y_ref))

    # Explicit materialized Pallas copy, small single-block case.
    z_ref = jnp.reshape(x, (8, 16, 16))
    z = jax.block_until_ready(view_pallas(x, 8, 16, 16, materialize=True))
    assert z.shape == (8, 16, 16)
    assert bool(jnp.all(z == z_ref))

    # Materialized copy exercising the multi-block pipelined path: even grid,
    # masked ragged trailing block, ~8 MiB total.
    big = jax.random.normal(jax.random.PRNGKey(0), (258, 8192), dtype=jnp.float32)
    b_ref = jnp.reshape(big, (-1,))
    b_out = jax.block_until_ready(view_pallas(big, -1, materialize=True))
    assert b_out.shape == (258 * 8192,)
    assert bool(jnp.all(b_out == b_ref))

    print("KERNEL_OK")
</pallas_src>

<mosaic_0001>
module attributes {stable_mosaic.version = 11 : i64} {
  func.func @_copy_kernel(%arg0: i32, %arg1: memref<1x2048xf32, #tpu.memory_space<vmem>>, %arg2: memref<1x2048xf32, #tpu.memory_space<vmem>>) attributes {dimension_semantics = [#tpu.dimension_semantics<parallel>], iteration_bounds = array<i64: 1>, scalar_prefetch = 0 : i64, scratch_operands = 0 : i64, tpu.core_type = #tpu.core_type<tc>, window_params = [{transform_indices = @transform_0, window_bounds = array<i64: 1, 2048>}, {transform_indices = @transform_1, window_bounds = array<i64: 1, 2048>}]} {
    %c0 = arith.constant 0 : index
    %c0_0 = arith.constant 0 : index
    %0 = vector.load %arg1[%c0, %c0_0] : memref<1x2048xf32, #tpu.memory_space<vmem>>, vector<1x2048xf32>
    %c0_1 = arith.constant 0 : index
    %c0_2 = arith.constant 0 : index
    %1 = vector.load %arg2[%c0_1, %c0_2] : memref<1x2048xf32, #tpu.memory_space<vmem>>, vector<1x2048xf32>
    tpu.vector_store %arg2[%c0_1, %c0_2], %0 {strides = array<i32>} : memref<1x2048xf32, #tpu.memory_space<vmem>>, vector<1x2048xf32>,
    return
  }
  func.func @transform_0(%arg0: i32) -> (i32, i32) {
    %c0_i32 = arith.constant 0 : i32
    %c0_i32_0 = arith.constant 0 : i32
    return %arg0, %c0_i32 : i32, i32
  }
  func.func @transform_1(%arg0: i32) -> (i32, i32) {
    %c0_i32 = arith.constant 0 : i32
    %c0_i32_0 = arith.constant 0 : i32
    return %arg0, %c0_i32 : i32, i32
  }
}

</mosaic_0001>

<bundles_post_ra>
// kernel: tpu_custom_call.1
= control target key start
LH: loop header
LB: loop body
LE: loop exit
PB: predicated region body
PF: predicated region fallthrough
CT: control target
= control target key end

     0   :  { %6 = vsyncpa [#allocation3], 0  ;;  %s126_s0 = inlined_call_operand.hbm [shape: f32[1,2048], index: 0, kind: input, shape index: {}]   ;;  %s127_s1 = inlined_call_operand.hbm [shape: f32[1,2048], index: 1, kind: output, shape index: {}]  }
   0x1   :  { %7 = vsyncpa [#allocation4], 0  ;;  %s90_s6 = smov [#allocation2]   ;;  %s42_s10 = scalar_lea.hbm %s126_s0, 256 }
   0x2   :  { %s14_s7 = sshll.u32 %s90_s6, 4  ;;  %p43_p0 = scmp.ne.s32.totalorder %s126_s0, %s42_s10  ;;  %s15_s7 = int_to_ptr.vmem [resolvable:$true] %s14_s7 }
   0x3   :  { %p46_p1 = scmp.lt.u32.totalorder %s42_s10, %s126_s0 }
   0x5   :  { %p48_p2 = pnand %p46_p1, %p43_p0 }
   0x7   :  { %51 = shalt.err (!%p48_p2)
}
   0x8   :  { %s52_s15 = scalar_lea.vmem %s15_s7, 256  ;;  %p57_p4 = scmp.lt.s32.totalorder %s15_s7, %s15_s7 }
   0x9   :  { %p53_p3 = scmp.ne.s32.totalorder %s15_s7, %s52_s15  ;;  %p58_p5 = scmp.lt.s32.totalorder %s52_s15, %s52_s15 }
   0xb   :  { %p59_p6 = por %p58_p5, %p57_p4 }
   0xd   :  { %p60_p7 = pnand %p59_p6, %p53_p3 }
   0xf   :  { %63 = shalt.err (!%p60_p7)
}
  0x10   :  { %17 = dma.hbm_to_vmem [thread:$0]  %s126_s0, 256, %s15_s7, [#allocation3]  }
  0x11   :  { %86 = dma.done.wait [#allocation3], 256  }
  0x12   :  { %87 = vsyncadd [#allocation3], 4294967040  ;;  %s91_s18 = smov [#allocation5]   ;;  %v21_v0 = vld [vmem:[#allocation2] sm:$0xff]  ;;  %v22_v1 = vld [vmem:[#allocation2 + $0x8] sm:$0xff] }
  0x13   :  { %s31_s19 = sshll.u32 %s91_s18, 4  ;;  %23 = vst [vmem:[#allocation5] sm:$0xff] %v21_v0  ;;  %24 = vst [vmem:[#allocation5 + $0x8] sm:$0xff] %v22_v1  ;;  %s32_s19 = int_to_ptr.vmem [resolvable:$true] %s31_s19 }
  0x14   :  { %s64_s20 = scalar_lea.vmem %s32_s19, 256  ;;  %p69_p9 = scmp.lt.s32.totalorder %s32_s19, %s32_s19 }
  0x15   :  { %p65_p8 = scmp.ne.s32.totalorder %s32_s19, %s64_s20  ;;  %p70_p10 = scmp.lt.s32.totalorder %s64_s20, %s64_s20 }
  0x17   :  { %p71_p11 = por %p70_p10, %p69_p9 }
  0x19   :  { %p72_p12 = pnand %p71_p11, %p65_p8 }
  0x1b   :  { %75 = shalt.err (!%p72_p12)
}
  0x1c   :  { %s76_s0 = scalar_lea.hbm %s127_s1, 256 }
  0x1d   :  { %p77_p13 = scmp.ne.s32.totalorder %s127_s1, %s76_s0  ;;  %p80_p0 = scmp.lt.u32.totalorder %s76_s0, %s127_s1 }
  0x1f   :  { %p82_p1 = pnand %p80_p0, %p77_p13 }
  0x21   :  { %85 = shalt.err (!%p82_p1)
}
  0x22   :  { %34 = dma.vmem_to_hbm [thread:$0]  %s32_s19, 256, %s127_s1, [#allocation4]  }
  0x23   :  { %88 = dma.done.wait [#allocation4], 256  }
  0x24   :  { %89 = vsyncadd [#allocation4], 4294967040 }
  0x25   :  { %38 = vsyncpa [#allocation3], 1 }
  0x26   :  { %39 = vsyncpa [#allocation4], 1 }

</bundles_post_ra>
